<compile_context>
chip_gen: v6e
topology: v6e:2x2x1
jax: 0.10.0
libtpu: 0.0.40
codegen_flags: <defaults>
</compile_context>

<pallas_src>
import jax
import jax.numpy as jnp
from jax import lax
from jax.experimental import pallas as pl
from jax.experimental.pallas import tpu as pltpu


def _round_up(x, m):
    return (x + m - 1) // m * m


def _embed_pe_kernel(idx_ref, tab_ref, out_ref):
    """One T-token tile: gather (embedding + PE) rows with one MXU matmul."""
    T = idx_ref.shape[0]
    R = tab_ref.shape[0]                        # V + S rows (emb table ++ PE slab)

    tok_id = idx_ref[:, 0:1]                    # (T, 1) int32 token ids in [0, V)
    pe_id = idx_ref[:, 1:2]                     # (T, 1) int32 ids in [V, V+S)

    # One-hot with (up to) two 1s per row: the token row and the PE row.  The
    # table is VMEM-resident, so there is zero per-token HBM traffic; the
    # matmul result is exactly emb[tok] + pe[pos] for 0/1 one-hot.
    cols = lax.broadcasted_iota(jnp.int32, (T, R), 1)
    onehot = ((tok_id == cols) | (pe_id == cols)).astype(jnp.float32)

    gathered = jnp.dot(onehot, tab_ref[...].astype(jnp.float32),
                       preferred_element_type=jnp.float32,
                       precision=lax.Precision.HIGHEST)

    out_ref[...] = gathered.astype(out_ref.dtype)
    # TODO(synk): training-mode dropout (Bernoulli mask + 1/(1-p) scale via
    # pltpu.prng_seed / pltpu.prng_random_bits); eval mode == identity.


def embedding_layer(ids, emb_table, pe_table, *, tokens_per_tile=256):
    """ids: (B, S) int32 token ids. Returns (B, S, D) in emb_table.dtype."""
    B, S = ids.shape
    V, D = emb_table.shape
    if S > pe_table.shape[0]:
        raise ValueError(f"sequence length {S} exceeds PE buffer {pe_table.shape[0]}")

    out_dtype = emb_table.dtype
    pe_slab = pe_table[:S].astype(out_dtype)            # (S, D): only rows needed
    table = jnp.concatenate([emb_table, pe_slab], 0)    # (V+S, D) fused lookup table
    R = V + S

    # Flatten tokens; pad to a whole number of T-token tiles (f32 sublane = 8).
    N = B * S
    T = min(tokens_per_tile, _round_up(N, 8))
    N_pad = _round_up(N, T)

    ids_flat = ids.reshape(N).astype(jnp.int32)
    pos_flat = jnp.tile(jnp.arange(S, dtype=jnp.int32), B) + V
    idx = jnp.stack([ids_flat, pos_flat], axis=1)        # (N, 2)
    if N_pad != N:
        # Padded rows select emb row 0 only (id 0 / pe_id 0 coincide); discarded.
        idx = jnp.pad(idx, ((0, N_pad - N), (0, 0)))

    # Explicit VMEM budget: resident fused table + double-buffered idx/out tiles.
    itemsize = jnp.dtype(out_dtype).itemsize
    budget = (2 * R * D * itemsize                        # fused table (conservative 2x)
              + 2 * T * D * itemsize                      # double-buffered output tile
              + 2 * T * 2 * 4)                            # double-buffered index tile
    vmem_limit = int(min(max(2 * budget, 8 * 2**20), 32 * 2**20))

    grid = (N_pad // T,)
    out_flat = pl.pallas_call(
        _embed_pe_kernel,
        out_shape=jax.ShapeDtypeStruct((N_pad, D), out_dtype),
        grid_spec=pltpu.PrefetchScalarGridSpec(
            num_scalar_prefetch=0,
            grid=grid,
            in_specs=[
                pl.BlockSpec((T, 2), lambda i: (i, 0)),   # [token_id, V+pos] tile
                pl.BlockSpec((R, D), lambda i: (0, 0)),   # fused table, VMEM resident
            ],
            out_specs=pl.BlockSpec((T, D), lambda i: (i, 0)),
        ),
        compiler_params=pltpu.CompilerParams(
            dimension_semantics=("parallel",),
            vmem_limit_bytes=vmem_limit),
    )(idx, table)

    return out_flat[:N].reshape(B, S, D)


def make_positional_encoding(max_len, d_model, dtype=jnp.float32):
    """Standard transformer sinusoidal PE: pe[p, 2i]=sin, pe[p, 2i+1]=cos."""
    pos = jnp.arange(max_len, dtype=jnp.float32)[:, None]
    div = jnp.exp(jnp.arange(0, d_model, 2, dtype=jnp.float32)
                  * (-jnp.log(10000.0) / d_model))
    pe = jnp.zeros((max_len, d_model), jnp.float32)
    pe = pe.at[:, 0::2].set(jnp.sin(pos * div))
    pe = pe.at[:, 1::2].set(jnp.cos(pos * div))
    return pe.astype(dtype)


if __name__ == "__main__":
    # Small, deterministic shapes consistent with the module.
    vocab_len, d_model, max_len = 64, 32, 16
    B, S = 2, 8

    key = jax.random.PRNGKey(0)
    k_emb, k_ids = jax.random.split(key)

    # nn.Embedding(vocab_len, d_model) weight, initialized deterministically.
    emb_table = jax.random.normal(k_emb, (vocab_len, d_model), jnp.float32)
    # Input token ids (the `x` of EmbeddingLayer.forward).
    ids = jax.random.randint(k_ids, (B, S), 0, vocab_len, dtype=jnp.int32)
    # PositionalEncoding(d_model, max_len) buffer.
    pe_table = make_positional_encoding(max_len, d_model)

    out = embedding_layer(ids, emb_table, pe_table)
    out = jax.block_until_ready(out)

    # Pure-JAX reference: embedding lookup + PE add (+ eval-mode dropout = id).
    ref = emb_table[ids] + pe_table[:S][None, :, :]
    assert out.shape == (B, S, d_model)
    assert jnp.allclose(out, ref, atol=1e-5, rtol=1e-5), "mismatch vs reference"

    print("KERNEL_OK")
</pallas_src>

<mosaic_0001>
module attributes {stable_mosaic.version = 11 : i64} {
  func.func @_embed_pe_kernel(%arg0: i32, %arg1: memref<16x2xi32, #tpu.memory_space<vmem>>, %arg2: memref<72x32xf32, #tpu.memory_space<vmem>>, %arg3: memref<16x32xf32, #tpu.memory_space<vmem>>) attributes {dimension_semantics = [#tpu.dimension_semantics<parallel>], iteration_bounds = array<i64: 1>, scalar_prefetch = 0 : i64, scratch_operands = 0 : i64, tpu.core_type = #tpu.core_type<tc>, window_params = [{transform_indices = @transform_0, window_bounds = array<i64: 16, 2>}, {pipeline_mode = #tpu.pipeline_mode<synchronous>, transform_indices = @transform_1, window_bounds = array<i64: 72, 32>}, {transform_indices = @transform_2, window_bounds = array<i64: 16, 32>}]} {
    %c0 = arith.constant 0 : index
    %c0_0 = arith.constant 0 : index
    %0 = vector.load %arg1[%c0, %c0_0] : memref<16x2xi32, #tpu.memory_space<vmem>>, vector<16x1xi32>
    %c0_1 = arith.constant 0 : index
    %c1 = arith.constant 1 : index
    %1 = vector.load %arg1[%c0_1, %c1] : memref<16x2xi32, #tpu.memory_space<vmem>>, vector<16x1xi32>
    %2 = tpu.iota {dimensions = array<i32: 1>} : vector<16x72xi32>
    %3 = vector.broadcast %0 : vector<16x1xi32> to vector<16x72xi32>
    %4 = arith.cmpi eq, %3, %2 : vector<16x72xi32>
    %5 = vector.broadcast %1 : vector<16x1xi32> to vector<16x72xi32>
    %6 = arith.cmpi eq, %5, %2 : vector<16x72xi32>
    %7 = arith.ori %4, %6 : vector<16x72xi1>
    %8 = arith.extui %7 : vector<16x72xi1> to vector<16x72xi32>
    %9 = arith.sitofp %8 : vector<16x72xi32> to vector<16x72xf32>
    %c0_2 = arith.constant 0 : index
    %c0_3 = arith.constant 0 : index
    %10 = vector.load %arg2[%c0_2, %c0_3] : memref<72x32xf32, #tpu.memory_space<vmem>>, vector<72x32xf32>
    %cst = arith.constant dense<0.000000e+00> : vector<16x32xf32>
    %11 = tpu.matmul %9, %10, %cst {dimension_numbers = #tpu.dot_dimension_numbers<[1], [0], [0], [1], [0, 0, 1, 1], [], []>, precision = #tpu.contract_precision<fp32>} : vector<16x72xf32>, vector<72x32xf32>, vector<16x32xf32> -> vector<16x32xf32>
    %c0_4 = arith.constant 0 : index
    %c0_5 = arith.constant 0 : index
    %12 = vector.load %arg3[%c0_4, %c0_5] : memref<16x32xf32, #tpu.memory_space<vmem>>, vector<16x32xf32>
    tpu.vector_store %arg3[%c0_4, %c0_5], %11 {strides = array<i32>} : memref<16x32xf32, #tpu.memory_space<vmem>>, vector<16x32xf32>,
    return
  }
  func.func @transform_0(%arg0: i32) -> (i32, i32) {
    %c0_i32 = arith.constant 0 : i32
    %c0_i32_0 = arith.constant 0 : i32
    return %arg0, %c0_i32 : i32, i32
  }
  func.func @transform_1(%arg0: i32) -> (i32, i32) {
    %c0_i32 = arith.constant 0 : i32
    %c0_i32_0 = arith.constant 0 : i32
    %c0_i32_1 = arith.constant 0 : i32
    return %c0_i32, %c0_i32_0 : i32, i32
  }
  func.func @transform_2(%arg0: i32) -> (i32, i32) {
    %c0_i32 = arith.constant 0 : i32
    %c0_i32_0 = arith.constant 0 : i32
    return %arg0, %c0_i32 : i32, i32
  }
}

</mosaic_0001>

<bundles_post_ra>
// kernel: tpu_custom_call.1
= control target key start
LH: loop header
LB: loop body
LE: loop exit
PB: predicated region body
PF: predicated region fallthrough
CT: control target
= control target key end

     0   :  { %v898_v3 = vmov 0   ;;  %s1155_s0 = inlined_call_operand.vmem [shape: s32[16,2], index: 0, kind: input, shape index: {}]   ;;  %s1156_s1 = inlined_call_operand.vmem [shape: f32[72,32], index: 1, kind: input, shape index: {}]   ;;  %s1157_s2 = inlined_call_operand.hbm [shape: f32[16,32], index: 2, kind: output, shape index: {}]  }
   0x1   :  { %v13_v0 = vld [vmem:[%s1155_s0 + $0x8] sm:$0xff]  ;;  %v12_v1 = vld [vmem:[%s1155_s0] sm:$0xff]  ;;  %874 = vset.pattern.permute.xlu1 %v898_v3  ;;  %872 = vset.pattern.permute.xlu0 %v898_v3  ;;  %v45_v5 = vld [vmem:[%s1156_s1 + $0x38] sm:$0xff] }
   0x2   :  { %v46_v2 = vld [vmem:[%s1156_s1 + $0x40] sm:$0xff]  ;;  %v44_v6 = vld [vmem:[%s1156_s1 + $0x30] sm:$0xff]  ;;  %v43_v7 = vld [vmem:[%s1156_s1 + $0x28] sm:$0xff]  ;;  %20 = vperm.xlu1 %874, %v13_v0   ;;  %17 = vperm.xlu0 %872, %v12_v1   ;;  %v939_v8 = vand.u32 4294901760, %v45_v5 }
   0x3   :  { %v928_v4 = vand.u32 4294901760, %v46_v2  ;;  %v941_v9 = vand.u32 4294901760, %v44_v6  ;;  %v943_v10 = vand.u32 4294901760, %v43_v7  ;;  %v42_v11 = vld [vmem:[%s1156_s1 + $0x20] sm:$0xff]  ;;  %v41_v12 = vld [vmem:[%s1156_s1 + $0x18] sm:$0xff]  ;;  %v40_v16 = vld [vmem:[%s1156_s1 + $0x10] sm:$0xff] }
   0x4   :  { %v954_v14 = vand.u32 4294901760, %v42_v11  ;;  %v957_v15 = vand.u32 4294901760, %v41_v12  ;;  %v39_v17 = vld [vmem:[%s1156_s1 + $0x8] sm:$0xff]  ;;  %v966_v18 = vsub.f32 %v45_v5, %v939_v8  ;;  %v975_v21 = vand.u32 4294901760, %v40_v16 }
   0x5   :  { %v952_v13 = vsub.f32 %v46_v2, %v928_v4  ;;  %740 = vmatprep.subr.mxu0 %v928_v4  ;;  %v969_v19 = vsub.f32 %v44_v6, %v941_v9  ;;  %v972_v20 = vsub.f32 %v43_v7, %v943_v10 }
   0x6   :  { %741 = vmatpush3.msra.mxu0 %v928_v4 }
   0x7   :  { %7 = vsyncpa [#allocation3], 0  ;;  %v978_v22 = vand.u32 4294901760, %v952_v13  ;;  %v981_v23 = vsub.f32 %v42_v11, %v954_v14  ;;  %v984_v24 = vsub.f32 %v41_v12, %v957_v15  ;;  %742 = vmatprep.subr.mxu0 %v939_v8  ;;  %v987_v25 = vand.u32 4294901760, %v39_v17  ;;  %v38_v35 = vld [vmem:[%s1156_s1] sm:$0xff]  ;;  %s901_s1 = smov [#allocation2]  }
   0x8   :  { %v899_v26 = vmov 1   ;;  %v990_v27 = vand.u32 4294901760, %v966_v18  ;;  %v993_v28 = vand.u32 4294901760, %v969_v19  ;;  %v996_v29 = vand.u32 4294901760, %v972_v20  ;;  %743 = vmatpush3.msra.mxu0 %v939_v8  ;;  %s655_s30 = sshll.u32 %s901_s1, 4  ;;  %s656_s30 = int_to_ptr.vmem [resolvable:$true] %s655_s30 }
   0x9   :  { %875 = vset.pattern.permute.xlu1 %v899_v26  ;;  %873 = vset.pattern.permute.xlu0 %v899_v26  ;;  %v166_v30 = vsub.f32 %v952_v13, %v978_v22  ;;  %v1001_v31 = vand.u32 4294901760, %v981_v23  ;;  %v1004_v32 = vsub.f32 %v40_v16, %v975_v21  ;;  %v1017_v38 = vand.u32 4294901760, %v984_v24  ;;  %s876_s3 = scalar_lea.vmem %s656_s30, 256  ;;  %p881_p1 = scmp.lt.s32.totalorder %s656_s30, %s656_s30 }
   0xa   :  { %28 = vperm.xlu1 %875, %v13_v0   ;;  %25 = vperm.xlu0 %873, %v12_v1   ;;  %v173_v33 = vsub.f32 %v966_v18, %v990_v27  ;;  %v180_v34 = vsub.f32 %v969_v19, %v993_v28  ;;  %v187_v37 = vsub.f32 %v972_v20, %v996_v29  ;;  %v1030_v44 = vand.u32 4294901760, %v38_v35  ;;  %p877_p0 = scmp.ne.s32.totalorder %s656_s30, %s876_s3  ;;  %p882_p2 = scmp.lt.s32.totalorder %s876_s3, %s876_s3 }
   0xb   :  { %v167_v36 = vand.u32 4294901760, %v166_v30  ;;  %744 = vmatprep.subr.mxu0 %v941_v9  ;;  %v1021_v39 = vsub.f32 %v39_v17, %v987_v25  ;;  %v194_v42 = vsub.f32 %v981_v23, %v1001_v31  ;;  %v1027_v43 = vand.u32 4294901760, %v1004_v32 }
   0xc   :  { %v174_v40 = vand.u32 4294901760, %v173_v33  ;;  %745 = vmatpush3.msra.mxu0 %v941_v9  ;;  %v181_v41 = vand.u32 4294901760, %v180_v34  ;;  %v188_v45 = vand.u32 4294901760, %v187_v37  ;;  %v201_v46 = vsub.f32 %v984_v24, %v1017_v38  ;;  %p883_p3 = por %p882_p2, %p881_p1 }
   0xd   :  { %761 = vmatprep.subr.mxu1 %v167_v36  ;;  %746 = vmatprep.subr.mxu0 %v943_v10  ;;  %v1036_v47 = vand.u32 4294901760, %v1021_v39  ;;  %v1039_v48 = vsub.f32 %v38_v35, %v1030_v44  ;;  %v195_v49 = vand.u32 4294901760, %v194_v42  ;;  %v208_v50 = vsub.f32 %v1004_v32, %v1027_v43 }
   0xe   :  { %762 = vmatpush3.msra.mxu1 %v167_v36  ;;  %747 = vmatpush3.msra.mxu0 %v943_v10  ;;  %v202_v52 = vand.u32 4294901760, %v201_v46  ;;  %v14_v58 = vlaneseq  ;;  %vm47_vm1 = vcmask 588800   ;;  %v900_v0 = vmov 0.0   ;;  %p884_p4 = pnand %p883_p3, %p877_p0 }
   0xf   :  { %763 = vmatprep.subr.mxu1 %v174_v40  ;;  %748 = vmatprep.subr.mxu0 %v954_v14  ;;  %v1046_v51 = vand.u32 4294901760, %v1039_v48  ;;  %v215_v53 = vsub.f32 %v1021_v39, %v1036_v47  ;;  %v209_v54 = vand.u32 4294901760, %v208_v50  ;;  %vm647_vm7 = vcmask 261120  }
  0x10   :  { %764 = vmatpush3.msra.mxu1 %v174_v40  ;;  %749 = vmatpush3.msra.mxu0 %v954_v14  ;;  %v15_v61 = vand.u32 127, %v14_v58 }
  0x11   :  { %765 = vmatprep.subr.mxu1 %v181_v41  ;;  %750 = vmatprep.subr.mxu0 %v957_v15  ;;  %v222_v55 = vsub.f32 %v1039_v48, %v1046_v51  ;;  %v216_v56 = vand.u32 4294901760, %v215_v53 }
  0x12   :  { %766 = vmatpush3.msra.mxu1 %v181_v41  ;;  %751 = vmatpush3.msra.mxu0 %v957_v15 }
  0x13   :  { %767 = vmatprep.subr.mxu1 %v188_v45  ;;  %752 = vmatprep.subr.mxu0 %v975_v21  ;;  %v223_v57 = vand.u32 4294901760, %v222_v55 }
  0x14   :  { %768 = vmatpush3.msra.mxu1 %v188_v45  ;;  %753 = vmatpush3.msra.mxu0 %v975_v21 }
  0x15   :  { %769 = vmatprep.subr.mxu1 %v195_v49  ;;  %754 = vmatprep.subr.mxu0 %v987_v25 }
  0x16   :  { %770 = vmatpush3.msra.mxu1 %v195_v49  ;;  %755 = vmatpush3.msra.mxu0 %v987_v25 }
  0x17   :  { %771 = vmatprep.subr.mxu1 %v202_v52  ;;  %756 = vmatprep.subr.mxu0 %v1030_v44 }
  0x18   :  { %772 = vmatpush3.msra.mxu1 %v202_v52  ;;  %757 = vmatpush3.msra.mxu0 %v1030_v44 }
  0x19   :  { %773 = vmatprep.subr.mxu1 %v209_v54  ;;  %782 = vmatprep.subr.mxu0 %v952_v13 }
  0x1a   :  { %774 = vmatpush3.msra.mxu1 %v209_v54 }
  0x1b   :  { %775 = vmatprep.subr.mxu1 %v216_v56 }
  0x1c   :  { %776 = vmatpush3.msra.mxu1 %v216_v56 }
  0x1d   :  { %777 = vmatprep.subr.mxu1 %v223_v57 }
  0x1e   :  { %778 = vmatpush3.msra.mxu1 %v223_v57 }
  0x1f   :  { %803 = vmatprep.subr.mxu1 %v928_v4 }
  0x7d   :  { %v18_v59 = vpop.permute.xlu0 %17  ;;  %v21_v60 = vpop.permute.xlu1 %20 }
  0x7e   :  { %vm23_vm0 = vcmp.eq.s32.totalorder %v21_v60, %v15_v61  ;;  %vm22_vm4 = vcmp.eq.s32.totalorder %v18_v59, %v15_v61 }
  0x85   :  { %v29_v62 = vpop.permute.xlu1 %28  ;;  %v26_v63 = vpop.permute.xlu0 %25 }
  0x86   :  { %vm31_vm2 = vcmp.eq.s32.totalorder %v29_v62, %v15_v61  ;;  %vm30_vm3 = vcmp.eq.s32.totalorder %v26_v63, %v15_v61 }
  0x87   :  { %vm33_vm5 = vmor %vm23_vm0, %vm31_vm2 }
  0x88   :  { %v1062_v1 = vsel %vm33_vm5, 1.0, %v900_v0  ;;  %vm32_vm6 = vmor %vm22_vm4, %vm30_vm3 }
  0x89   :  { %v52_v2 = vsel %vm47_vm1, %v1062_v1, 0  ;;  %v1066_v3 = vsel %vm32_vm6, 1.0, %v900_v0 }
  0x8a   :  { %v139_v5 = vsub.f32 %v52_v2, %v52_v2  ;;  %v49_v6 = vsel %vm47_vm1, %v1066_v3, 0  ;;  %779 = vmatprep.mubr.msk.f32.mxu1 %vm47_vm1, %v1066_v3 }
  0x8b   :  { %v129_v7 = vsub.f32 %v49_v6, %v49_v6  ;;  %780 = vmatmul.mubr.msk.f32.vlgmr.msra.gmra.mxu1 %vm47_vm1, %v1062_v1 }
  0x8c   :  { %804 = vmatpush3.msra.mxu1 %v928_v4  ;;  %v140_v11 = vand.u32 4294901760, %v139_v5 }
  0x8d   :  { %805 = vmatprep.subr.mxu1 %v939_v8  ;;  %v130_v12 = vand.u32 4294901760, %v129_v7 }
  0x8e   :  { %806 = vmatpush3.msra.mxu1 %v939_v8  ;;  %v141_v16 = vsub.f32 %v139_v5, %v140_v11 }
  0x8f   :  { %807 = vmatprep.subr.mxu1 %v941_v9  ;;  %821 = vmatprep.mubr.f32.mxu1 %v130_v12  ;;  %v131_v17 = vsub.f32 %v129_v7, %v130_v12 }
  0x90   :  { %808 = vmatpush3.msra.mxu1 %v941_v9  ;;  %v142_v26 = vand.u32 4294901760, %v141_v16 }
  0x91   :  { %809 = vmatprep.subr.mxu1 %v943_v10  ;;  %v132_v30 = vand.u32 4294901760, %v131_v17 }
  0x92   :  { %810 = vmatpush3.msra.mxu1 %v943_v10 }
  0x93   :  { %811 = vmatprep.subr.mxu1 %v954_v14  ;;  %758 = vmatprep.mubr.f32.mxu0 %v132_v30 }
  0x94   :  { %812 = vmatpush3.msra.mxu1 %v954_v14  ;;  %759 = vmatmul.mubr.f32.vlgmr.msra.gmra.mxu0 %v142_v26 }
  0x95   :  { %783 = vmatpush3.msra.mxu0 %v952_v13  ;;  %813 = vmatprep.subr.mxu1 %v957_v15 }
  0x96   :  { %784 = vmatprep.subr.mxu0 %v966_v18  ;;  %800 = vmatprep.mubr.f32.mxu0 %v129_v7 }
  0x97   :  { %814 = vmatpush3.msra.mxu1 %v957_v15  ;;  %785 = vmatpush3.msra.mxu0 %v966_v18 }
  0x98   :  { %815 = vmatprep.subr.mxu1 %v975_v21  ;;  %786 = vmatprep.subr.mxu0 %v969_v19 }
  0x99   :  { %816 = vmatpush3.msra.mxu1 %v975_v21  ;;  %787 = vmatpush3.msra.mxu0 %v969_v19 }
  0x9a   :  { %817 = vmatprep.subr.mxu1 %v987_v25  ;;  %788 = vmatprep.subr.mxu0 %v972_v20 }
  0x9b   :  { %818 = vmatpush3.msra.mxu1 %v987_v25  ;;  %789 = vmatpush3.msra.mxu0 %v972_v20 }
  0x9c   :  { %819 = vmatprep.subr.mxu1 %v1030_v44  ;;  %790 = vmatprep.subr.mxu0 %v981_v23 }
  0x9d   :  { %820 = vmatpush3.msra.mxu1 %v1030_v44  ;;  %791 = vmatpush3.msra.mxu0 %v981_v23 }
  0x9e   :  { %822 = vmatmul.mubr.f32.vlgmr.msra.gmra.mxu1 %v140_v11  ;;  %845 = vmatprep.subr.mxu1 %v928_v4 }
  0x9f   :  { %792 = vmatprep.subr.mxu0 %v984_v24  ;;  %846 = vmatpush3.msra.mxu1 %v928_v4 }
  0xa0   :  { %863 = vmatprep.mubr.msk.f32.mxu1 %vm47_vm1, %v1066_v3  ;;  %793 = vmatpush3.msra.mxu0 %v984_v24 }
  0xa1   :  { %847 = vmatprep.subr.mxu1 %v939_v8  ;;  %794 = vmatprep.subr.mxu0 %v1004_v32 }
  0xa2   :  { %848 = vmatpush3.msra.mxu1 %v939_v8  ;;  %795 = vmatpush3.msra.mxu0 %v1004_v32 }
  0xa3   :  { %849 = vmatprep.subr.mxu1 %v941_v9  ;;  %796 = vmatprep.subr.mxu0 %v1021_v39 }
  0xa4   :  { %850 = vmatpush3.msra.mxu1 %v941_v9  ;;  %797 = vmatpush3.msra.mxu0 %v1021_v39 }
  0xa5   :  { %851 = vmatprep.subr.mxu1 %v943_v10  ;;  %798 = vmatprep.subr.mxu0 %v1039_v48 }
  0xa6   :  { %852 = vmatpush3.msra.mxu1 %v943_v10  ;;  %799 = vmatpush3.msra.mxu0 %v1039_v48 }
  0xa7   :  { %853 = vmatprep.subr.mxu1 %v954_v14  ;;  %801 = vmatmul.mubr.f32.vlgmr.msra.gmra.mxu0 %v139_v5 }
  0xa8   :  { %824 = vmatprep.subr.mxu0 %v978_v22  ;;  %854 = vmatpush3.msra.mxu1 %v954_v14 }
  0xa9   :  { %825 = vmatpush3.msra.mxu0 %v978_v22  ;;  %842 = vmatprep.mubr.msk.f32.mxu0 %vm47_vm1, %v1066_v3 }
  0xaa   :  { %855 = vmatprep.subr.mxu1 %v957_v15  ;;  %826 = vmatprep.subr.mxu0 %v990_v27 }
  0xab   :  { %856 = vmatpush3.msra.mxu1 %v957_v15  ;;  %827 = vmatpush3.msra.mxu0 %v990_v27 }
  0xac   :  { %857 = vmatprep.subr.mxu1 %v975_v21  ;;  %828 = vmatprep.subr.mxu0 %v993_v28 }
  0xad   :  { %858 = vmatpush3.msra.mxu1 %v975_v21  ;;  %829 = vmatpush3.msra.mxu0 %v993_v28 }
  0xae   :  { %859 = vmatprep.subr.mxu1 %v987_v25  ;;  %830 = vmatprep.subr.mxu0 %v996_v29 }
  0xaf   :  { %860 = vmatpush3.msra.mxu1 %v987_v25  ;;  %831 = vmatpush3.msra.mxu0 %v996_v29 }
  0xb0   :  { %861 = vmatprep.subr.mxu1 %v1030_v44  ;;  %832 = vmatprep.subr.mxu0 %v1001_v31 }
  0xb1   :  { %862 = vmatpush3.msra.mxu1 %v1030_v44  ;;  %833 = vmatpush3.msra.mxu0 %v1001_v31 }
  0xb2   :  { %864 = vmatmul.mubr.msk.f32.vlgmr.msra.gmra.mxu1 %vm47_vm1, %v1062_v1  ;;  %834 = vmatprep.subr.mxu0 %v1017_v38 }
  0xb3   :  { %835 = vmatpush3.msra.mxu0 %v1017_v38 }
  0xb4   :  { %836 = vmatprep.subr.mxu0 %v1027_v43 }
  0xb5   :  { %837 = vmatpush3.msra.mxu0 %v1027_v43 }
  0xb6   :  { %838 = vmatprep.subr.mxu0 %v1036_v47 }
  0xb7   :  { %839 = vmatpush3.msra.mxu0 %v1036_v47 }
  0xb8   :  { %840 = vmatprep.subr.mxu0 %v1046_v51 }
  0xb9   :  { %841 = vmatpush3.msra.mxu0 %v1046_v51 }
  0xba   :  { %843 = vmatmul.mubr.msk.f32.vlgmr.msra.gmra.mxu0 %vm47_vm1, %v1062_v1 }
 0x14b   :  { %v781_v8 = vpop.f32.mrf.mxu1 }
 0x14d   :  { %v260_v13 = vpop.f32.mrf.mxu1 }
 0x154   :  { %v760_v4 = vpop.f32.mrf.mxu0 }
 0x155   :  { %v267_v14 = vadd.f32 %v781_v8, %v760_v4 }
 0x156   :  { %v134_v9 = vpop.f32.mrf.mxu0 }
 0x157   :  { %v261_v19 = vadd.f32 %v260_v13, %v134_v9 }
 0x15e   :  { %v823_v15 = vpop.f32.mrf.mxu1 }
 0x160   :  { %v445_v22 = vpop.f32.mrf.mxu1 }
 0x167   :  { %v802_v10 = vpop.f32.mrf.mxu0 }
 0x168   :  { %v364_v20 = vadd.f32 %v802_v10, %v267_v14 }
 0x169   :  { %v356_v18 = vpop.f32.mrf.mxu0 }
 0x16a   :  { %v357_v21 = vadd.f32 %v356_v18, %v261_v19  ;;  %v454_v23 = vadd.f32 %v823_v15, %v364_v20 }
 0x16c   :  { %v446_v28 = vadd.f32 %v445_v22, %v357_v21 }
 0x172   :  { %v865_v24 = vpop.f32.mrf.mxu1 }
 0x174   :  { %v637_v33 = vpop.f32.mrf.mxu1 }
 0x17a   :  { %v844_v25 = vpop.f32.mrf.mxu0 }
 0x17b   :  { %v558_v27 = vadd.f32 %v844_v25, %v454_v23 }
 0x17c   :  { %v551_v29 = vpop.f32.mrf.mxu0 }
 0x17d   :  { %v644_v31 = vadd.f32 %v865_v24, %v558_v27  ;;  %v552_v32 = vadd.f32 %v551_v29, %v446_v28 }
 0x17f   :  { %649 = vst.msk [vmem:[#allocation2 + $0x8] sm:$0xff] %vm647_vm7, %v644_v31  ;;  %v638_v34 = vadd.f32 %v637_v33, %v552_v32 }
 0x181   :  { %648 = vst.msk [vmem:[#allocation2] sm:$0xff] %vm647_vm7, %v638_v34 }
 0x182   :  { %887 = shalt.err (!%p884_p4)
}
 0x183   :  { %s902_s4 = smov 128   ;;  %s903_s5 = smov 8  }
 0x184   :  { %661 = dma.vmem_to_hbm [thread:$0]  %s656_s30, 256, %s1157_s2, [#allocation3], %s902_s4, %s902_s4, %s903_s5  }
 0x185   :  { %896 = dma.done.wait [#allocation3], 256  }
 0x186   :  { %897 = vsyncadd [#allocation3], 4294967040 }
 0x187   :  { %665 = vsyncpa [#allocation3], 1 }

</bundles_post_ra>
